<compile_context>
chip_gen: v5e
topology: v5e:2x2
jax: 0.10.0
libtpu: 0.0.40
codegen_flags: <defaults>
</compile_context>

<pallas_src>
import functools

import jax
import jax.numpy as jnp
from jax.experimental import pallas as pl
from jax.experimental.pallas import tpu as pltpu

LEAKY_SLOPE = 0.01   # torch.nn.LeakyReLU default negative_slope
LN_EPS = 1e-5        # torch.nn.LayerNorm default eps


def _ru8(n):
    return ((n + 7) // 8) * 8


def _leaky_relu(x):
    return jnp.maximum(x, LEAKY_SLOPE * x)


# ---------------------------------------------------------------------------
# Parameter packing: one contiguous (rows, width) f32 slab; every section
# starts at an 8-aligned row so in-kernel static slices stay tile-aligned.
# ---------------------------------------------------------------------------
def make_layout(latent_dim, action_dim, hidden_dim):
    L, A, H = latent_dim, action_dim, hidden_dim
    width = max(H, L)
    off, rows = {}, 0

    def sect(name, nrows):
        nonlocal rows
        off[name] = rows
        rows += _ru8(nrows)

    sect("w1", L + A)   # (L+A, H)  first linear of `code` (z and a stacked)
    sect("b1", 1)       # (1, H)
    sect("wp1", L)      # (L, H)    first linear of `projection`
    sect("bp1", 1)      # (1, H)
    sect("w2", H)       # (H, L)    second linear of `code`
    sect("b2", 1)       # (1, L)
    sect("ln_g", 1)     # (1, L)    LayerNorm gamma
    sect("ln_b", 1)     # (1, L)    LayerNorm beta
    sect("wp2", H)      # (H, L)    second linear of `projection`
    sect("bp2", 1)      # (1, L)
    return off, rows, width


def pack_params(params, latent_dim, action_dim, hidden_dim):
    off, rows, width = make_layout(latent_dim, action_dim, hidden_dim)
    slab = jnp.zeros((rows, width), jnp.float32)

    def put(s, name, arr):
        arr = jnp.asarray(arr, jnp.float32)
        return s.at[off[name]:off[name] + arr.shape[0], :arr.shape[1]].set(arr)

    slab = put(slab, "w1", jnp.concatenate([params["w1z"], params["w1a"]], axis=0))
    slab = put(slab, "b1", params["b1"])
    slab = put(slab, "wp1", params["wp1"])
    slab = put(slab, "bp1", params["bp1"])
    slab = put(slab, "w2", params["w2"])
    slab = put(slab, "b2", params["b2"])
    slab = put(slab, "ln_g", params["ln_g"])
    slab = put(slab, "ln_b", params["ln_b"])
    slab = put(slab, "wp2", params["wp2"])
    slab = put(slab, "bp2", params["bp2"])
    return slab


# ---------------------------------------------------------------------------
# Kernel
# ---------------------------------------------------------------------------
def advantage_decoder_kernel(x_ref, p_ref, out_ref, *, L, A, H, off):
    x = x_ref[...]                                      # (TB, L+A) f32

    def w(name, nrows, ncols):
        o = off[name]                                   # static python ints
        return p_ref[o:o + nrows, :ncols]

    # ---- code = tanh(LayerNorm(Linear2(LeakyReLU(Linear1([z, a]))))) ----
    h = jnp.dot(x, w("w1", L + A, H), preferred_element_type=jnp.float32)
    h = _leaky_relu(h + w("b1", 1, H))                  # (TB, H)
    c = jnp.dot(h, w("w2", H, L), preferred_element_type=jnp.float32) \
        + w("b2", 1, L)                                 # (TB, L)

    # LayerNorm over last dim (biased variance, eps inside rsqrt == torch)
    mean = jnp.mean(c, axis=-1, keepdims=True)
    cen = c - mean
    var = jnp.mean(cen * cen, axis=-1, keepdims=True)
    c = cen * jax.lax.rsqrt(var + LN_EPS) * w("ln_g", 1, L) + w("ln_b", 1, L)
    code = jnp.tanh(c)                                  # (TB, L)

    # ---- proj = tanh(Linear4(LeakyReLU(Linear3(code)))) ----
    p = jnp.dot(code, w("wp1", L, H), preferred_element_type=jnp.float32)
    p = _leaky_relu(p + w("bp1", 1, H))                 # (TB, H)
    p = jnp.dot(p, w("wp2", H, L), preferred_element_type=jnp.float32) \
        + w("bp2", 1, L)                                # (TB, L)

    out_ref[...] = jnp.tanh(p).astype(out_ref.dtype)


# ---------------------------------------------------------------------------
# Wrapper
# ---------------------------------------------------------------------------
def advantage_decoder_forward(z, action, param_slab, *, latent_dim, action_dim,
                              hidden_dim, tile_b=512):
    """z: (B, L) f32, action: (B, A) f32, param_slab from pack_params -> (B, L)."""
    B = z.shape[0]
    L, A, H = latent_dim, action_dim, hidden_dim
    off, rows, width = make_layout(L, A, H)
    assert param_slab.shape == (rows, width)

    # Concatenate once in the wrapper -> single first-layer contraction.
    x = jnp.concatenate([z.astype(jnp.float32), action.astype(jnp.float32)], axis=1)

    # Batch tiling (sublane-aligned); pad batch up to a multiple of tile_b.
    tile_b = max(8, min(_ru8(tile_b), _ru8(B)))
    num_tiles = pl.cdiv(B, tile_b)
    Bp = num_tiles * tile_b
    if Bp != B:
        x = jnp.pad(x, ((0, Bp - B), (0, 0)))

    kernel = functools.partial(advantage_decoder_kernel, L=L, A=A, H=H, off=off)

    def x_map(i):
        return (i, 0)

    def w_map(i):
        return (0, 0)      # weight slab stays resident across grid steps

    out = pl.pallas_call(
        kernel,
        out_shape=jax.ShapeDtypeStruct((Bp, L), jnp.float32),
        grid=(num_tiles,),
        in_specs=[
            pl.BlockSpec((tile_b, L + A), x_map),     # activations (batch-blocked)
            pl.BlockSpec((rows, width), w_map),       # resident weights
        ],
        out_specs=pl.BlockSpec((tile_b, L), x_map),
        compiler_params=pltpu.CompilerParams(
            dimension_semantics=("parallel",)),
    )(x, param_slab)
    return out[:B]
    # TODO(synk): output lane dim is L (=32) < 128 -> masked stores; packing
    # independent problem instances along lanes would raise store efficiency.


# ---------------------------------------------------------------------------
# Synthetic params + pure-JAX reference (matches the PyTorch module)
# ---------------------------------------------------------------------------
def init_params(key, latent_dim, action_dim, hidden_dim):
    ks = jax.random.split(key, 4)

    def lin(k, fan_in, fan_out):
        bound = 1.0 / jnp.sqrt(fan_in)
        kw, kb = jax.random.split(k)
        w = jax.random.uniform(kw, (fan_in, fan_out), jnp.float32, -bound, bound)
        b = jax.random.uniform(kb, (1, fan_out), jnp.float32, -bound, bound)
        return w, b

    w1, b1 = lin(ks[0], latent_dim + action_dim, hidden_dim)
    w2, b2 = lin(ks[1], hidden_dim, latent_dim)
    wp1, bp1 = lin(ks[2], latent_dim, hidden_dim)
    wp2, bp2 = lin(ks[3], hidden_dim, latent_dim)

    return {
        "w1z": w1[:latent_dim], "w1a": w1[latent_dim:], "b1": b1,
        "w2": w2, "b2": b2,
        "ln_g": jnp.ones((1, latent_dim), jnp.float32),
        "ln_b": jnp.zeros((1, latent_dim), jnp.float32),
        "wp1": wp1, "bp1": bp1,
        "wp2": wp2, "bp2": bp2,
    }


def reference_forward(z, action, p):
    hp = jax.lax.Precision.HIGHEST
    x = jnp.concatenate([z, action], axis=1)
    w1 = jnp.concatenate([p["w1z"], p["w1a"]], axis=0)
    h = _leaky_relu(jnp.dot(x, w1, precision=hp) + p["b1"])
    c = jnp.dot(h, p["w2"], precision=hp) + p["b2"]
    mean = jnp.mean(c, axis=-1, keepdims=True)
    var = jnp.mean((c - mean) ** 2, axis=-1, keepdims=True)
    c = (c - mean) / jnp.sqrt(var + LN_EPS) * p["ln_g"] + p["ln_b"]
    code = jnp.tanh(c)
    pr = _leaky_relu(jnp.dot(code, p["wp1"], precision=hp) + p["bp1"])
    pr = jnp.dot(pr, p["wp2"], precision=hp) + p["bp2"]
    return jnp.tanh(pr)


if __name__ == "__main__":
    LATENT, ACTION, HIDDEN = 32, 4, 64

    key = jax.random.PRNGKey(0)
    kz, ka, kp, kz2, ka2 = jax.random.split(key, 5)
    params = init_params(kp, LATENT, ACTION, HIDDEN)
    slab = pack_params(params, LATENT, ACTION, HIDDEN)

    # Small batch (single grid step).
    B = 8
    z = jax.random.normal(kz, (B, LATENT), jnp.float32)
    action = jax.random.normal(ka, (B, ACTION), jnp.float32)
    out = advantage_decoder_forward(z, action, slab, latent_dim=LATENT,
                                    action_dim=ACTION, hidden_dim=HIDDEN)
    out = jax.block_until_ready(out)
    ref = reference_forward(z, action, params)
    assert out.shape == (B, LATENT)
    assert jnp.allclose(out, ref, atol=1e-4, rtol=1e-4), "mismatch (B=8)"

    # Ragged batch exercising the multi-step parallel grid + padding path.
    B2 = 50
    z2 = jax.random.normal(kz2, (B2, LATENT), jnp.float32)
    action2 = jax.random.normal(ka2, (B2, ACTION), jnp.float32)
    out2 = advantage_decoder_forward(z2, action2, slab, latent_dim=LATENT,
                                     action_dim=ACTION, hidden_dim=HIDDEN,
                                     tile_b=16)
    out2 = jax.block_until_ready(out2)
    ref2 = reference_forward(z2, action2, params)
    assert out2.shape == (B2, LATENT)
    assert jnp.allclose(out2, ref2, atol=1e-4, rtol=1e-4), "mismatch (B=50)"

    print("KERNEL_OK")
</pallas_src>

<mosaic_0001>
module attributes {stable_mosaic.version = 11 : i64} {
  func.func @advantage_decoder_kernel(%arg0: i32, %arg1: memref<8x36xf32, #tpu.memory_space<vmem>>, %arg2: memref<248x64xf32, #tpu.memory_space<vmem>>, %arg3: memref<8x32xf32, #tpu.memory_space<vmem>>) attributes {dimension_semantics = [#tpu.dimension_semantics<parallel>], iteration_bounds = array<i64: 1>, scalar_prefetch = 0 : i64, scratch_operands = 0 : i64, tpu.core_type = #tpu.core_type<tc>, window_params = [{transform_indices = @transform_0, window_bounds = array<i64: 8, 36>}, {pipeline_mode = #tpu.pipeline_mode<synchronous>, transform_indices = @transform_1, window_bounds = array<i64: 248, 64>}, {transform_indices = @transform_2, window_bounds = array<i64: 8, 32>}]} {
    %c0 = arith.constant 0 : index
    %c0_0 = arith.constant 0 : index
    %0 = vector.load %arg1[%c0, %c0_0] : memref<8x36xf32, #tpu.memory_space<vmem>>, vector<8x36xf32>
    %c0_1 = arith.constant 0 : index
    %c0_2 = arith.constant 0 : index
    %1 = vector.load %arg2[%c0_1, %c0_2] : memref<248x64xf32, #tpu.memory_space<vmem>>, vector<36x64xf32>
    %cst = arith.constant dense<0.000000e+00> : vector<8x64xf32>
    %2 = tpu.matmul %0, %1, %cst {dimension_numbers = #tpu.dot_dimension_numbers<[1], [0], [0], [1], [0, 0, 1, 1], [], []>} : vector<8x36xf32>, vector<36x64xf32>, vector<8x64xf32> -> vector<8x64xf32>
    %c40 = arith.constant 40 : index
    %c0_3 = arith.constant 0 : index
    %3 = vector.load %arg2[%c40, %c0_3] : memref<248x64xf32, #tpu.memory_space<vmem>>, vector<1x64xf32>
    %4 = vector.broadcast %3 : vector<1x64xf32> to vector<8x64xf32>
    %5 = arith.addf %2, %4 : vector<8x64xf32>
    %cst_4 = arith.constant 0.00999999977 : f32
    %6 = vector.broadcast %cst_4 : f32 to vector<8x64xf32>
    %7 = arith.mulf %6, %5 : vector<8x64xf32>
    %8 = arith.maximumf %5, %7 : vector<8x64xf32>
    %c88 = arith.constant 88 : index
    %c0_5 = arith.constant 0 : index
    %9 = vector.load %arg2[%c88, %c0_5] : memref<248x64xf32, #tpu.memory_space<vmem>>, vector<64x32xf32>
    %cst_6 = arith.constant dense<0.000000e+00> : vector<8x32xf32>
    %10 = tpu.matmul %8, %9, %cst_6 {dimension_numbers = #tpu.dot_dimension_numbers<[1], [0], [0], [1], [0, 0, 1, 1], [], []>} : vector<8x64xf32>, vector<64x32xf32>, vector<8x32xf32> -> vector<8x32xf32>
    %c152 = arith.constant 152 : index
    %c0_7 = arith.constant 0 : index
    %11 = vector.load %arg2[%c152, %c0_7] : memref<248x64xf32, #tpu.memory_space<vmem>>, vector<1x32xf32>
    %12 = vector.broadcast %11 : vector<1x32xf32> to vector<8x32xf32>
    %13 = arith.addf %10, %12 : vector<8x32xf32>
    %cst_8 = arith.constant dense<0.000000e+00> : vector<8xf32>
    %14 = vector.multi_reduction <add>, %13, %cst_8 [1] : vector<8x32xf32> to vector<8xf32>
    %15 = vector.shape_cast %14 : vector<8xf32> to vector<8x1xf32>
    %cst_9 = arith.constant 3.200000e+01 : f32
    %16 = vector.broadcast %cst_9 : f32 to vector<8x1xf32>
    %17 = arith.divf %15, %16 : vector<8x1xf32>
    %18 = vector.broadcast %17 : vector<8x1xf32> to vector<8x32xf32>
    %19 = arith.subf %13, %18 : vector<8x32xf32>
    %20 = arith.mulf %19, %19 : vector<8x32xf32>
    %cst_10 = arith.constant dense<0.000000e+00> : vector<8xf32>
    %21 = vector.multi_reduction <add>, %20, %cst_10 [1] : vector<8x32xf32> to vector<8xf32>
    %22 = vector.shape_cast %21 : vector<8xf32> to vector<8x1xf32>
    %cst_11 = arith.constant 3.200000e+01 : f32
    %23 = vector.broadcast %cst_11 : f32 to vector<8x1xf32>
    %24 = arith.divf %22, %23 : vector<8x1xf32>
    %cst_12 = arith.constant 9.99999974E-6 : f32
    %25 = vector.broadcast %cst_12 : f32 to vector<8x1xf32>
    %26 = arith.addf %24, %25 : vector<8x1xf32>
    %27 = math.rsqrt %26 : vector<8x1xf32>
    %28 = vector.broadcast %27 : vector<8x1xf32> to vector<8x32xf32>
    %29 = arith.mulf %19, %28 : vector<8x32xf32>
    %c160 = arith.constant 160 : index
    %c0_13 = arith.constant 0 : index
    %30 = vector.load %arg2[%c160, %c0_13] : memref<248x64xf32, #tpu.memory_space<vmem>>, vector<1x32xf32>
    %31 = vector.broadcast %30 : vector<1x32xf32> to vector<8x32xf32>
    %32 = arith.mulf %29, %31 : vector<8x32xf32>
    %c168 = arith.constant 168 : index
    %c0_14 = arith.constant 0 : index
    %33 = vector.load %arg2[%c168, %c0_14] : memref<248x64xf32, #tpu.memory_space<vmem>>, vector<1x32xf32>
    %34 = vector.broadcast %33 : vector<1x32xf32> to vector<8x32xf32>
    %35 = arith.addf %32, %34 : vector<8x32xf32>
    %36 = math.tanh %35 : vector<8x32xf32>
    %c48 = arith.constant 48 : index
    %c0_15 = arith.constant 0 : index
    %37 = vector.load %arg2[%c48, %c0_15] : memref<248x64xf32, #tpu.memory_space<vmem>>, vector<32x64xf32>
    %cst_16 = arith.constant dense<0.000000e+00> : vector<8x64xf32>
    %38 = tpu.matmul %36, %37, %cst_16 {dimension_numbers = #tpu.dot_dimension_numbers<[1], [0], [0], [1], [0, 0, 1, 1], [], []>} : vector<8x32xf32>, vector<32x64xf32>, vector<8x64xf32> -> vector<8x64xf32>
    %c80 = arith.constant 80 : index
    %c0_17 = arith.constant 0 : index
    %39 = vector.load %arg2[%c80, %c0_17] : memref<248x64xf32, #tpu.memory_space<vmem>>, vector<1x64xf32>
    %40 = vector.broadcast %39 : vector<1x64xf32> to vector<8x64xf32>
    %41 = arith.addf %38, %40 : vector<8x64xf32>
    %cst_18 = arith.constant 0.00999999977 : f32
    %42 = vector.broadcast %cst_18 : f32 to vector<8x64xf32>
    %43 = arith.mulf %42, %41 : vector<8x64xf32>
    %44 = arith.maximumf %41, %43 : vector<8x64xf32>
    %c176 = arith.constant 176 : index
    %c0_19 = arith.constant 0 : index
    %45 = vector.load %arg2[%c176, %c0_19] : memref<248x64xf32, #tpu.memory_space<vmem>>, vector<64x32xf32>
    %cst_20 = arith.constant dense<0.000000e+00> : vector<8x32xf32>
    %46 = tpu.matmul %44, %45, %cst_20 {dimension_numbers = #tpu.dot_dimension_numbers<[1], [0], [0], [1], [0, 0, 1, 1], [], []>} : vector<8x64xf32>, vector<64x32xf32>, vector<8x32xf32> -> vector<8x32xf32>
    %c240 = arith.constant 240 : index
    %c0_21 = arith.constant 0 : index
    %47 = vector.load %arg2[%c240, %c0_21] : memref<248x64xf32, #tpu.memory_space<vmem>>, vector<1x32xf32>
    %48 = vector.broadcast %47 : vector<1x32xf32> to vector<8x32xf32>
    %49 = arith.addf %46, %48 : vector<8x32xf32>
    %50 = math.tanh %49 : vector<8x32xf32>
    %c0_22 = arith.constant 0 : index
    %c0_23 = arith.constant 0 : index
    %51 = vector.load %arg3[%c0_22, %c0_23] : memref<8x32xf32, #tpu.memory_space<vmem>>, vector<8x32xf32>
    tpu.vector_store %arg3[%c0_22, %c0_23], %50 {strides = array<i32>} : memref<8x32xf32, #tpu.memory_space<vmem>>, vector<8x32xf32>,
    return
  }
  func.func @transform_0(%arg0: i32) -> (i32, i32) {
    %c0_i32 = arith.constant 0 : i32
    %c0_i32_0 = arith.constant 0 : i32
    return %arg0, %c0_i32 : i32, i32
  }
  func.func @transform_1(%arg0: i32) -> (i32, i32) {
    %c0_i32 = arith.constant 0 : i32
    %c0_i32_0 = arith.constant 0 : i32
    %c0_i32_1 = arith.constant 0 : i32
    return %c0_i32, %c0_i32_0 : i32, i32
  }
  func.func @transform_2(%arg0: i32) -> (i32, i32) {
    %c0_i32 = arith.constant 0 : i32
    %c0_i32_0 = arith.constant 0 : i32
    return %arg0, %c0_i32 : i32, i32
  }
}

</mosaic_0001>

<bundles_post_ra>
// kernel: tpu_custom_call.1
= control target key start
LH: loop header
LB: loop body
LE: loop exit
PB: predicated region body
PF: predicated region fallthrough
CT: control target
= control target key end

     0   :  { %vm24_vm0 = vcmask 1043456   ;;  %s372_s0 = inlined_call_operand.vmem [shape: f32[8,36], index: 0, kind: input, shape index: {}]   ;;  %s373_s1 = inlined_call_operand.vmem [shape: f32[248,64], index: 1, kind: input, shape index: {}]   ;;  %s374_s2 = inlined_call_operand.hbm [shape: f32[8,32], index: 2, kind: output, shape index: {}]  }
   0x1   :  { %v17_v0 = vld [vmem:[%s373_s1 + $0x20] sm:$0xf]  ;;  %v16_v1 = vld [vmem:[%s373_s1 + $0x18] sm:$0xff]  ;;  %v15_v2 = vld [vmem:[%s373_s1 + $0x10] sm:$0xff] }
   0x2   :  { %203 = vmatpush.msk.msra.mxu0 %vm24_vm0, %v17_v0  ;;  %v57_v3 = vld [vmem:[%s373_s1 + $0x90] sm:$0xff]  ;;  %v56_v4 = vld [vmem:[%s373_s1 + $0x88] sm:$0xff]  ;;  %v55_v6 = vld [vmem:[%s373_s1 + $0x80] sm:$0xff] }
   0x3   :  { %v14_v5 = vld [vmem:[%s373_s1 + $0x8] sm:$0xff]  ;;  %72 = vmatpush.msra.mxu1 %v57_v3 }
   0x4   :  { %40 = vmatpush.msra.mxu0 %v16_v1 }
   0x5   :  { %73 = vmatpush.msra.mxu1 %v56_v4 }
   0x6   :  { %41 = vmatpush.msra.mxu0 %v15_v2 }
   0x7   :  { %7 = vsyncpa [#allocation3], 0  ;;  %v13_v7 = vld [vmem:[%s373_s1] sm:$0xff]  ;;  %v54_v8 = vld [vmem:[%s373_s1 + $0x78] sm:$0xff]  ;;  %vm20_vm1 = vcmask 293888   ;;  %74 = vmatpush.msra.mxu1 %v55_v6  ;;  %vm60_vm2 = vcmask 523264  }
   0x8   :  { %42 = vmatpush.msra.mxu0 %v14_v5  ;;  %v12_v9 = vld [vmem:[%s372_s0] sm:$0xff]  ;;  %v53_v10 = vld [vmem:[%s373_s1 + $0x70] sm:$0xff]  ;;  %v52_v11 = vld [vmem:[%s373_s1 + $0x68] sm:$0xff]  ;;  %vm84_vm3 = vcmask 261120   ;;  %v250_v23 = vmov 32.0   ;;  %s251_s15 = smov [#allocation2]  }
   0x9   :  { %75 = vmatpush.msra.mxu1 %v54_v8  ;;  %v51_v12 = vld [vmem:[%s373_s1 + $0x60] sm:$0xff]  ;;  %v50_v13 = vld [vmem:[%s373_s1 + $0x58] sm:$0xff]  ;;  %v210_v14 = vld [vmem:[%s373_s1 + $0x28] ss:$0 sm:$0xff]  ;;  %216 = vrcp.f32 %v250_v23  ;;  %s192_s16 = sshll.u32 %s251_s15, 4  ;;  %s194_s19 = sshll.u32 %s374_s2, 4  ;;  %s193_s16 = int_to_ptr.vmem [resolvable:$true] %s192_s16  ;;  %s195_s19 = int_to_ptr.hbm [resolvable:$true] %s194_s19 }
   0xa   :  { %43 = vmatpush.msra.mxu0 %v13_v7  ;;  %v211_v19 = vld [vmem:[%s373_s1 + $0x98] ss:$0 sm:$0xff]  ;;  %v124_v35 = vld [vmem:[%s373_s1 + $0x48] sm:$0xff]  ;;  %v123_v36 = vld [vmem:[%s373_s1 + $0x40] sm:$0xff] }
   0xb   :  { %204 = vmatmul.msk.f32.vlgmr.msra.gmra.mxu0 %vm20_vm1, %v12_v9  ;;  %76 = vmatpush.msra.mxu1 %v53_v10  ;;  %v122_v37 = vld [vmem:[%s373_s1 + $0x38] sm:$0xff]  ;;  %v121_v39 = vld [vmem:[%s373_s1 + $0x30] sm:$0xff]  ;;  %v159_v42 = vld [vmem:[%s373_s1 + $0xe8] sm:$0xff] }
   0xc   :  { %142 = vmatpush.msra.mxu2 %v124_v35  ;;  %v158_v43 = vld [vmem:[%s373_s1 + $0xe0] sm:$0xff]  ;;  %173 = vmatpush.msra.mxu3 %v159_v42  ;;  %v157_v44 = vld [vmem:[%s373_s1 + $0xd8] sm:$0xff]  ;;  %v156_v45 = vld [vmem:[%s373_s1 + $0xd0] sm:$0xff] }
   0xd   :  { %77 = vmatpush.msra.mxu1 %v52_v11  ;;  %v212_v52 = vld [vmem:[%s373_s1 + $0xa0] ss:$0 sm:$0xff]  ;;  %v213_v54 = vld [vmem:[%s373_s1 + $0xa8] ss:$0 sm:$0xff]  ;;  %v153_v61 = vld [vmem:[%s373_s1 + $0xb8] sm:$0xff] }
   0xe   :  { %143 = vmatpush.msra.mxu2 %v123_v36  ;;  %174 = vmatpush.msra.mxu3 %v158_v43  ;;  %v155_v59 = vld [vmem:[%s373_s1 + $0xc8] sm:$0xff]  ;;  %v154_v60 = vld [vmem:[%s373_s1 + $0xc0] sm:$0xff]  ;;  %v152_v62 = vld [vmem:[%s373_s1 + $0xb0] sm:$0xff] }
   0xf   :  { %78 = vmatpush.msra.mxu1 %v51_v12  ;;  %v217_v24 = vpop.eup %216  ;;  %v214_v63 = vld [vmem:[%s373_s1 + $0x50] ss:$0 sm:$0xff] }
  0x10   :  { %v89_v25 = vmul.f32 32.0, %v217_v24  ;;  %vm93_vm4 = vweird.f32 %v217_v24  ;;  %144 = vmatpush.msra.mxu2 %v122_v37  ;;  %175 = vmatpush.msra.mxu3 %v157_v44  ;;  %v215_v4 = vld [vmem:[%s373_s1 + $0xf0] ss:$0 sm:$0xff] }
  0x11   :  { %79 = vmatpush.msra.mxu1 %v50_v13 }
  0x12   :  { %v90_v26 = vsub.f32 1.0, %v89_v25  ;;  %145 = vmatpush.msra.mxu2 %v121_v39  ;;  %176 = vmatpush.msra.mxu3 %v156_v45 }
  0x14   :  { %v91_v27 = vmul.f32 %v217_v24, %v90_v26  ;;  %177 = vmatpush.msra.mxu3 %v155_v59 }
  0x16   :  { %v92_v28 = vadd.f32 %v217_v24, %v91_v27  ;;  %178 = vmatpush.msra.mxu3 %v154_v60 }
  0x18   :  { %v94_v29 = vsel %vm93_vm4, %v217_v24, %v92_v28  ;;  %179 = vmatpush.msra.mxu3 %v153_v61 }
  0x1a   :  { %180 = vmatpush.msra.mxu3 %v152_v62 }
  0x88   :  { %v45_v15 = vpop.f32.mrf.mxu0 }
  0x89   :  { %v46_v16 = vadd.f32 %v210_v14, %v45_v15 }
  0x8b   :  { %v48_v17 = vmul.f32 0.01, %v46_v16 }
  0x8d   :  { %v49_v18 = vmax.f32 %v46_v16, %v48_v17 }
  0x8f   :  { %205 = vmatmul.msk.f32.vlgmr.msra.gmra.mxu1 %vm60_vm2, %v49_v18 }
 0x10c   :  { %v81_v20 = vpop.f32.mrf.mxu1 }
 0x10d   :  { %v82_v21 = vadd.f32 %v211_v19, %v81_v20 }
 0x10f   :  { %v85_v22 = vsel %vm84_vm3, %v82_v21, 0.0 }
 0x110   :  { %86 = vadd.xlane.f32.xlu0 %v85_v22 }
 0x183   :  { %v87_v30 = vpop.xlane.xlu0 %86 }
 0x184   :  { %v95_v31 = vmul.f32 %v94_v29, %v87_v30 }
 0x186   :  { %v96_v32 = vsub.f32 %v82_v21, %v95_v31 }
 0x188   :  { %v97_v33 = vmul.f32 %v96_v32, %v96_v32 }
 0x18a   :  { %v98_v34 = vsel %vm84_vm3, %v97_v33, 0.0 }
 0x18b   :  { %99 = vadd.xlane.f32.xlu0 %v98_v34 }
 0x1fe   :  { %v100_v38 = vpop.xlane.xlu0 %99 }
 0x1ff   :  { %v101_v40 = vmul.f32 %v100_v38, %v94_v29 }
 0x201   :  { %v102_v41 = vadd.f32 1e-05, %v101_v40 }
 0x203   :  { %218 = vrsqrt.f32 %v102_v41  ;;  %vm109_vm6 = vweird.f32 %v102_v41 }
 0x209   :  { %v219_v46 = vpop.eup %218 }
 0x20a   :  { %v104_v47 = vmul.f32 %v219_v46, %v102_v41  ;;  %vm110_vm5 = vweird.f32 %v219_v46 }
 0x20b   :  { %vm111_vm7 = vmor %vm109_vm6, %vm110_vm5 }
 0x20c   :  { %v105_v48 = vmul.f32 %v219_v46, %v104_v47 }
 0x20e   :  { %v106_v49 = vmul.f32 0.5, %v105_v48 }
 0x210   :  { %v107_v50 = vsub.f32 1.5, %v106_v49 }
 0x212   :  { %v108_v51 = vmul.f32 %v219_v46, %v107_v50 }
 0x214   :  { %v112_v53 = vsel %vm111_vm7, %v219_v46, %v108_v51 }
 0x215   :  { %v113_v55 = vmul.f32 %v112_v53, %v96_v32 }
 0x217   :  { %v116_v56 = vmul.f32 %v212_v52, %v113_v55 }
 0x219   :  { %v119_v57 = vadd.f32 %v213_v54, %v116_v56 }
 0x21b   :  { %220 = vtanh.f32 %v119_v57 }
 0x221   :  { %v221_v58 = vpop.eup %220 }
 0x222   :  { %206 = vmatmul.msk.f32.vlgmr.msra.gmra.mxu2 %vm84_vm3, %v221_v58 }
 0x2a5   :  { %v147_v0 = vpop.f32.mrf.mxu2 }
 0x2a6   :  { %v148_v1 = vadd.f32 %v214_v63, %v147_v0 }
 0x2a8   :  { %v150_v2 = vmul.f32 0.01, %v148_v1 }
 0x2aa   :  { %v151_v3 = vmax.f32 %v148_v1, %v150_v2 }
 0x2ac   :  { %207 = vmatmul.msk.f32.vlgmr.msra.gmra.mxu3 %vm60_vm2, %v151_v3 }
 0x32f   :  { %v182_v5 = vpop.f32.mrf.mxu3 }
 0x330   :  { %v183_v6 = vadd.f32 %v215_v4, %v182_v5 }
 0x332   :  { %222 = vtanh.f32 %v183_v6 }
 0x338   :  { %v223_v7 = vpop.eup %222 }
 0x339   :  { %186 = vst.msk [vmem:[#allocation2] sm:$0xff] %vm84_vm3, %v223_v7 }
 0x33a   :  { %197 = dma.vmem_to_hbm [thread:$0]  %s193_s16, 128, %s195_s19, [#allocation3]  }
 0x33b   :  { %248 = dma.done.wait [#allocation3], 128  }
 0x33c   :  { %249 = vsyncadd [#allocation3], 4294967168 }
 0x33d   :  { %202 = vsyncpa [#allocation3], 1 }

</bundles_post_ra>
